<compile_context>
chip_gen: v7x
topology: tpu7x:2x2x1
jax: 0.10.0
libtpu: 0.0.40
codegen_flags: <defaults>
</compile_context>

<pallas_src>
import functools

import jax
import jax.numpy as jnp
from jax.experimental import pallas as pl
from jax.experimental.pallas import tpu as pltpu


def _round_up(n, m):
    return ((n + m - 1) // m) * m


def regression_head_kernel(x_ref, wd_ref, bd_ref, wo_ref, bo_ref, o_ref, *,
                           bf16_epilogue):
    # x_ref:  (TB, H) bf16  token-0 features (pre-sliced / pre-cast in XLA)
    # wd_ref: (H, H)  bf16  dense weight, [in, out] layout, VMEM-resident
    # bd_ref: (1, H)  f32   dense bias
    # wo_ref: (1, H)  f32   out_proj weight
    # bo_ref: (1,)    f32   out_proj bias (SMEM scalar)
    # o_ref:  (TB, 1) f32   output tile
    h = jnp.dot(x_ref[...], wd_ref[...], preferred_element_type=jnp.float32)
    if bf16_epilogue:
        # v6e/v7x only: bf16 VPU/EUP roughly doubles epilogue throughput.
        h = jnp.tanh((h + bd_ref[...]).astype(jnp.bfloat16))
        prod = (h * wo_ref[...].astype(jnp.bfloat16)).astype(jnp.float32)
    else:
        # f32 epilogue: required on v5e (no bf16 VPU/EUP) and most accurate.
        h = jnp.tanh(h + bd_ref[...])
        prod = h * wo_ref[...]
    # out_proj (H -> 1): VPU multiply + XLU lane reduction; a width-1 MXU matmul
    # would waste >99% of MXU columns.
    y = jnp.sum(prod, axis=-1, keepdims=True) + bo_ref[0]
    o_ref[...] = y.astype(o_ref.dtype)


def prepare_regression_head_params(w_dense, b_dense, w_out, b_out):
    """One-time (model-load) param prep: bf16 weight cast + reshapes.

    w_dense: (H, H) in [in, out] layout (torch Linear.weight.T), b_dense: (H,),
    w_out: (H,) (torch out_proj.weight[0]), b_out: (1,).
    """
    H = w_dense.shape[0]
    return (
        w_dense.astype(jnp.bfloat16),               # (H, H) bf16, MXU-ready
        b_dense.reshape(1, H).astype(jnp.float32),  # (1, H)
        w_out.reshape(1, H).astype(jnp.float32),    # (1, H)
        b_out.reshape(1).astype(jnp.float32),       # (1,) -> SMEM scalar
    )


def _pick_block_b(B):
    # Small batch: one tile. Larger batch: >= 2 tiles (v7x has two TensorCores),
    # capped at 256 rows to fill the 256x256 MXU on v6e/v7x. 16-row granularity
    # matches bf16 sublane packing so blocked batches satisfy the (16,128) rule.
    if B <= 128:
        return _round_up(B, 16)
    return min(256, _round_up(-(-B // 2), 16))


def regression_head(features, w_dense_bf16, b_dense, w_out, b_out, *,
                    block_b=None, bf16_epilogue=False):
    """features: [B, S, H]. Params as from prepare_regression_head_params.

    Returns [B, 1] float32 (dropout is identity at inference).
    """
    B, S, H = features.shape

    # --- XLA-side prep (touches only [B, H] / [H, H] data) -------------------
    # Token-0 slice + bf16 cast in XLA: contiguous [B, H], half the DMA bytes.
    x0 = features[:, 0, :].astype(jnp.bfloat16)

    # Guards (no-ops when params were prepared via prepare_regression_head_params).
    wd = w_dense_bf16 if w_dense_bf16.dtype == jnp.bfloat16 else w_dense_bf16.astype(jnp.bfloat16)
    bd = b_dense.reshape(1, H).astype(jnp.float32)
    wo = w_out.reshape(1, H).astype(jnp.float32)
    bo = b_out.reshape(1).astype(jnp.float32)

    TB = _round_up(block_b, 16) if block_b is not None else _pick_block_b(B)
    G = pl.cdiv(B, TB)
    B_pad = G * TB
    if B_pad != B:
        # Pad only the tiny [B, H] token-0 tensor (never the full [B, S, H]).
        # Padded rows produce garbage outputs that are sliced off below and are
        # never reduced across the batch.
        x0 = jnp.pad(x0, ((0, B_pad - B), (0, 0)))

    # VMEM budget: single-buffered bf16 weight + double-buffered activations.
    needed = (
        H * H * 2                 # wd  (bf16, Buffered(1))
        + 2 * TB * H * 2          # x tiles (bf16, double-buffered)
        + 2 * H * 4               # bd + wo (f32, Buffered(1))
        + 2 * TB * 128 * 4        # out tiles ((TB,1) lane-padded, double-buffered)
        + TB * H * 4              # h intermediate / spill headroom
    )
    vmem_limit = int(min(128 * 1024 * 1024, max(2 * needed, 16 * 1024 * 1024)))
    # NOTE: for H >= ~4096 on v7x (64 MiB VMEM) the resident (H, H) bf16 weight no
    # longer fits; add a K grid axis with an f32 accumulator scratch in that regime.

    kernel = functools.partial(regression_head_kernel, bf16_epilogue=bf16_epilogue)

    out = pl.pallas_call(
        kernel,
        out_shape=jax.ShapeDtypeStruct((B_pad, 1), jnp.float32),
        grid=(G,),
        in_specs=[
            # Activations: one contiguous (TB, H) bf16 tile per grid step.
            pl.BlockSpec((TB, H), lambda i: (i, 0)),
            # Weights/biases: constant block index -> VMEM-resident, one buffer.
            pl.BlockSpec((H, H), lambda i: (0, 0), pipeline_mode=pl.Buffered(1)),
            pl.BlockSpec((1, H), lambda i: (0, 0), pipeline_mode=pl.Buffered(1)),
            pl.BlockSpec((1, H), lambda i: (0, 0), pipeline_mode=pl.Buffered(1)),
            # Scalar out_proj bias rides the scalar path.
            pl.BlockSpec(memory_space=pltpu.MemorySpace.SMEM),
        ],
        # (TB, 1) column output; lane-dense (1, B) layout only pays once G is large.
        out_specs=pl.BlockSpec((TB, 1), lambda i: (i, 0)),
        compiler_params=pltpu.CompilerParams(
            dimension_semantics=("parallel",),
            vmem_limit_bytes=vmem_limit,
        ),
        cost_estimate=pl.CostEstimate(
            flops=2 * B_pad * H * H + 4 * B_pad * H,
            transcendentals=B_pad * H,
            bytes_accessed=2 * B_pad * H + 2 * H * H + 8 * H + 4 + 4 * B_pad,
        ),
    )(x0, wd, bd, wo, bo)

    if B_pad != B:
        out = out[:B]
    return out


def regression_head_ref(features, w_dense, b_dense, w_out, b_out, *, quantize_bf16=False):
    """Pure-JAX reference mirroring the torch module (dropout identity at inference)."""
    x = features[:, 0, :]
    wd = w_dense
    if quantize_bf16:
        x = x.astype(jnp.bfloat16).astype(jnp.float32)
        wd = wd.astype(jnp.bfloat16).astype(jnp.float32)
    h = jnp.tanh(jnp.dot(x, wd, precision=jax.lax.Precision.HIGHEST)
                 + b_dense.reshape(1, -1))
    return jnp.sum(h * w_out.reshape(1, -1), axis=-1, keepdims=True) + b_out.reshape(1, 1)


if __name__ == "__main__":
    # Small config consistent with the module: hidden_size=32, seq=8, batch=2.
    B, S, H = 2, 8, 32
    key = jax.random.PRNGKey(0)
    k_feat, k_wd, k_bd, k_wo, k_bo = jax.random.split(key, 5)

    features = jax.random.normal(k_feat, (B, S, H), dtype=jnp.float32)
    # torch.nn.Linear(H, H) / Linear(H, 1) parameters, stored [in, out].
    w_dense = jax.random.normal(k_wd, (H, H), dtype=jnp.float32) * 0.05
    b_dense = jax.random.normal(k_bd, (H,), dtype=jnp.float32) * 0.05
    w_out = jax.random.normal(k_wo, (H,), dtype=jnp.float32) * 0.05
    b_out = jax.random.normal(k_bo, (1,), dtype=jnp.float32) * 0.05

    # TODO(synk): torch.nn.Dropout is a no-op at inference; training-mode
    # stochastic dropout is not implemented here.

    # One-time param prep (bf16 weight cast hoisted out of the per-call path).
    params = prepare_regression_head_params(w_dense, b_dense, w_out, b_out)

    run = jax.jit(lambda f: regression_head(f, *params))
    out = jax.block_until_ready(run(features))

    assert out.shape == (B, 1), out.shape
    # Strict check vs. a reference with identical bf16 input/weight quantization.
    ref_matched = regression_head_ref(features, w_dense, b_dense, w_out, b_out,
                                      quantize_bf16=True)
    assert jnp.allclose(out, ref_matched, atol=1e-4, rtol=1e-4), (out, ref_matched)
    # Loose check vs. the pure-f32 torch-semantics reference.
    ref_f32 = regression_head_ref(features, w_dense, b_dense, w_out, b_out,
                                  quantize_bf16=False)
    assert jnp.allclose(out, ref_f32, atol=5e-2, rtol=5e-2), (out, ref_f32)

    print("KERNEL_OK")
</pallas_src>

<mosaic_0001>
module attributes {stable_mosaic.version = 11 : i64} {
  func.func @regression_head_kernel(%arg0: i32, %arg1: memref<16x32xbf16, #tpu.memory_space<vmem>>, %arg2: memref<32x32xbf16, #tpu.memory_space<vmem>>, %arg3: memref<1x32xf32, #tpu.memory_space<vmem>>, %arg4: memref<1x32xf32, #tpu.memory_space<vmem>>, %arg5: memref<1xf32, #tpu.memory_space<smem>>, %arg6: memref<16x1xf32, #tpu.memory_space<vmem>>) attributes {dimension_semantics = [#tpu.dimension_semantics<parallel>], iteration_bounds = array<i64: 1>, scalar_prefetch = 0 : i64, scratch_operands = 0 : i64, tpu.core_type = #tpu.core_type<tc>, window_params = [{transform_indices = @transform_0, window_bounds = array<i64: 16, 32>}, {pipeline_mode = #tpu.pipeline_mode<synchronous>, transform_indices = @transform_1, window_bounds = array<i64: 32, 32>}, {pipeline_mode = #tpu.pipeline_mode<synchronous>, transform_indices = @transform_2, window_bounds = array<i64: 1, 32>}, {pipeline_mode = #tpu.pipeline_mode<synchronous>, transform_indices = @transform_3, window_bounds = array<i64: 1, 32>}, {transform_indices = @transform_4, window_bounds = array<i64: 1>}, {transform_indices = @transform_5, window_bounds = array<i64: 16, 1>}]} {
    %c0 = arith.constant 0 : index
    %c0_0 = arith.constant 0 : index
    %0 = vector.load %arg1[%c0, %c0_0] : memref<16x32xbf16, #tpu.memory_space<vmem>>, vector<16x32xbf16>
    %c0_1 = arith.constant 0 : index
    %c0_2 = arith.constant 0 : index
    %1 = vector.load %arg2[%c0_1, %c0_2] : memref<32x32xbf16, #tpu.memory_space<vmem>>, vector<32x32xbf16>
    %cst = arith.constant dense<0.000000e+00> : vector<16x32xf32>
    %2 = tpu.matmul %0, %1, %cst {dimension_numbers = #tpu.dot_dimension_numbers<[1], [0], [0], [1], [0, 0, 1, 1], [], []>} : vector<16x32xbf16>, vector<32x32xbf16>, vector<16x32xf32> -> vector<16x32xf32>
    %c0_3 = arith.constant 0 : index
    %c0_4 = arith.constant 0 : index
    %3 = vector.load %arg3[%c0_3, %c0_4] : memref<1x32xf32, #tpu.memory_space<vmem>>, vector<1x32xf32>
    %4 = vector.broadcast %3 : vector<1x32xf32> to vector<16x32xf32>
    %5 = arith.addf %2, %4 : vector<16x32xf32>
    %6 = math.tanh %5 : vector<16x32xf32>
    %c0_5 = arith.constant 0 : index
    %c0_6 = arith.constant 0 : index
    %7 = vector.load %arg4[%c0_5, %c0_6] : memref<1x32xf32, #tpu.memory_space<vmem>>, vector<1x32xf32>
    %8 = vector.broadcast %7 : vector<1x32xf32> to vector<16x32xf32>
    %9 = arith.mulf %6, %8 : vector<16x32xf32>
    %cst_7 = arith.constant dense<0.000000e+00> : vector<16xf32>
    %10 = vector.multi_reduction <add>, %9, %cst_7 [1] : vector<16x32xf32> to vector<16xf32>
    %11 = vector.shape_cast %10 : vector<16xf32> to vector<16x1xf32>
    %c0_8 = arith.constant 0 : index
    %12 = memref.load %arg5[%c0_8] : memref<1xf32, #tpu.memory_space<smem>>
    %13 = vector.broadcast %12 : f32 to vector<16x1xf32>
    %14 = arith.addf %11, %13 : vector<16x1xf32>
    %c0_9 = arith.constant 0 : index
    %c0_10 = arith.constant 0 : index
    %15 = vector.load %arg6[%c0_9, %c0_10] : memref<16x1xf32, #tpu.memory_space<vmem>>, vector<16x1xf32>
    tpu.vector_store %arg6[%c0_9, %c0_10], %14 {strides = array<i32>} : memref<16x1xf32, #tpu.memory_space<vmem>>, vector<16x1xf32>,
    return
  }
  func.func @transform_0(%arg0: i32) -> (i32, i32) {
    %c0_i32 = arith.constant 0 : i32
    %c0_i32_0 = arith.constant 0 : i32
    return %arg0, %c0_i32 : i32, i32
  }
  func.func @transform_1(%arg0: i32) -> (i32, i32) {
    %c0_i32 = arith.constant 0 : i32
    %c0_i32_0 = arith.constant 0 : i32
    %c0_i32_1 = arith.constant 0 : i32
    return %c0_i32, %c0_i32_0 : i32, i32
  }
  func.func @transform_2(%arg0: i32) -> (i32, i32) {
    %c0_i32 = arith.constant 0 : i32
    %c0_i32_0 = arith.constant 0 : i32
    %c0_i32_1 = arith.constant 0 : i32
    return %c0_i32, %c0_i32_0 : i32, i32
  }
  func.func @transform_3(%arg0: i32) -> (i32, i32) {
    %c0_i32 = arith.constant 0 : i32
    %c0_i32_0 = arith.constant 0 : i32
    %c0_i32_1 = arith.constant 0 : i32
    return %c0_i32, %c0_i32_0 : i32, i32
  }
  func.func @transform_4(%arg0: i32) -> i32 {
    %c0_i32 = arith.constant 0 : i32
    %c0_i32_0 = arith.constant 0 : i32
    return %c0_i32 : i32
  }
  func.func @transform_5(%arg0: i32) -> (i32, i32) {
    %c0_i32 = arith.constant 0 : i32
    %c0_i32_0 = arith.constant 0 : i32
    return %arg0, %c0_i32 : i32, i32
  }
}

</mosaic_0001>

<bundles_post_ra>
// kernel: _lambda_.1
= control target key start
LH: loop header
LB: loop body
LE: loop exit
PB: predicated region body
PF: predicated region fallthrough
CT: control target
= control target key end

     0   :  { %v151_v0 = vmov 0.0   ;;  %vm152_vm0 = vmmov 0   ;;  %vm52_vm1 = vcmask 261120   ;;  %vm118_vm2 = vcmask 7168   ;;  %s210_s1 = inlined_call_operand.vmem [shape: bf16[32,32], index: 1, kind: input, shape index: {}]   ;;  %s211_s0 = inlined_call_operand.vmem [shape: bf16[16,32], index: 0, kind: input, shape index: {}]   ;;  %s212_s2 = inlined_call_operand.vmem [shape: f32[1,32], index: 2, kind: input, shape index: {}]   ;;  %s213_s3 = inlined_call_operand.vmem [shape: f32[1,32], index: 3, kind: input, shape index: {}]   ;;  %s214_s4 = inlined_call_operand.<no memory space> [shape: f32[1], index: 4, kind: input, shape index: {}]   ;;  %s215_s5 = inlined_call_operand.vmem [shape: f32[16,1], index: 5, kind: output, shape index: {}]  }
   0x1   :  { %134 = vmatprep.subr.bf16.mxu0 %v151_v0  ;;  %v144_v1 = vld [vmem:[%s210_s1] sm:$0xff]   ;;  %138 = vmatprep.mubr.msk.bf16.mxu0 %vm152_vm0, %v151_v0  ;;  %v145_v2 = vld [vmem:[%s210_s1 + $0x8] sm:$0xff]   ;;  %v115_v18 = vstv %s214_s4 }
   0x2   :  { %135 = vmatpush3.bf16.msra.mxu0 %v144_v1  ;;  %v146_v3 = vld [vmem:[%s211_s0] sm:$0xff]  }
   0x3   :  { %136 = vmatprep.subr.bf16.mxu0 %v151_v0  ;;  %v125_v4 = vld [vmem:[%s212_s2] ss:$0 sm:$0xff] }
   0x4   :  { %v130_v11 = vld [vmem:[%s213_s3] ss:$0 sm:$0xff] }
   0x6   :  { %137 = vmatpush3.bf16.msra.mxu0 %v145_v2 }
   0x9   :  { %139 = vmatmul.mubr.msk.bf16.vlgmr.msra.gmra.mrb[0].mxu0 %vm52_vm1, %v146_v3 }
  0xdc   :  { %v90_v5 = vpop.f32.mrb[0].mxu0 }
  0xdd   :  { %v91_v6 = vadd.f32 %v125_v4, %v90_v5  ;;  %v140_v7 = vpop.f32.mrb[1].mxu0 }
  0xde   :  { %v93_v8 = vpop.f32.mrb[2].mxu0 }
  0xdf   :  { %147 = vtanh.f32 %v91_v6  ;;  %v94_v9 = vadd.f32 %v125_v4, %v93_v8  ;;  %v141_v10 = vpop.f32.mrb[3].mxu0 }
  0xe1   :  { %149 = vtanh.f32 %v94_v9 }
  0xe9   :  { %v148_v12 = vpop.eup %147 }
  0xea   :  { %v106_v13 = vmul.f32 %v148_v12, %v130_v11 }
  0xeb   :  { %v150_v14 = vpop.eup %149 }
  0xec   :  { %v108_v15 = vsel %vm52_vm1, %v106_v13, 0.0  ;;  %v107_v16 = vmul.f32 %v150_v14, %v130_v11 }
  0xed   :  { %109 = vadd.xlane.f32.xlu0 %v108_v15 }
  0xee   :  { %v111_v17 = vsel %vm52_vm1, %v107_v16, 0.0 }
  0xf1   :  { %112 = vadd.xlane.f32.xlu0 %v111_v17 }
 0x17a   :  { %v110_v19 = vpop.xlane.xlu0 %109 }
 0x17b   :  { %v116_v20 = vadd.f32 %v115_v18, %v110_v19 }
 0x17d   :  { %119 = vst.msk [vmem:[%s215_s5] sm:$0xff] %vm118_vm2, %v116_v20 }
 0x17e   :  { %v113_v21 = vpop.xlane.xlu0 %112 }
 0x17f   :  { %v117_v22 = vadd.f32 %v115_v18, %v113_v21 }
 0x181   :  { %120 = vst.msk [vmem:[%s215_s5 + $0x8] sm:$0xff] %vm118_vm2, %v117_v22 }

</bundles_post_ra>
